<compile_context>
chip_gen: v6e
topology: v6e:2x2x1
jax: 0.10.0
libtpu: 0.0.40
codegen_flags: <defaults>
</compile_context>

<pallas_src>
import functools

import jax
import jax.numpy as jnp
from jax.experimental import pallas as pl
from jax.experimental.pallas import tpu as pltpu

_LANE = 128
_SUBLANE = 8


def _round_up(x: int, m: int) -> int:
    return ((x + m - 1) // m) * m


def _quadratic_kernel(x_ref, w_ref, o_ref, acc_ref, *, bf16_mxu: bool):
    k = pl.program_id(2)

    @pl.when(k == 0)
    def _():
        acc_ref[...] = jnp.zeros_like(acc_ref)

    x = x_ref[...]
    xsq = x * x                                   # square on the VPU
    if bf16_mxu:
        xsq = xsq.astype(jnp.bfloat16)            # W already stored bf16 by wrapper
    acc_ref[...] += jnp.dot(xsq, w_ref[...],      # (tm,tk)@(tk,tn) on the MXU
                            preferred_element_type=jnp.float32)

    @pl.when(k == pl.num_programs(2) - 1)
    def _():
        o_ref[...] = acc_ref[...].astype(o_ref.dtype)


def _vmem_caps():
    """(budget_bytes, vmem_limit_bytes), generation-aware with a safe fallback."""
    try:
        cap = int(pltpu.get_tpu_info().vmem_capacity_bytes)
    except Exception:
        cap = 64 * 1024 * 1024  # conservative: safe for v7x's per-TC 64 MiB
    budget = cap // 2           # ~32 MiB (v7x) / ~64 MiB (v5e/v6e)
    limit = (3 * cap) // 4      # ~48 MiB (v7x) / ~96 MiB (v5e/v6e)
    return budget, limit


def _choose_tiles(B, K, N, x_item, w_item, out_item, budget):
    """Pick (tm, tn, tk).  VMEM model: 2x W block (double-buffered input),
    2x x block, 2x out block, plus the f32 (tm, tn) accumulator."""
    kp0 = _round_up(K, _LANE)
    np0 = _round_up(N, _LANE)

    # Keep the whole (padded) W in a single block if its double-buffered copy
    # fits in half the budget; otherwise tile N/K so each W block is modest.
    if 2 * kp0 * np0 * w_item <= budget // 2:
        tk, tn = kp0, np0
    else:
        tk = min(kp0, 512)
        tn = min(np0, 512)
        while 2 * tk * tn * w_item > budget // 4:
            if tk >= tn and tk > _LANE:
                tk = max(_LANE, ((tk // 2) // _LANE) * _LANE)
            elif tn > _LANE:
                tn = max(_LANE, ((tn // 2) // _LANE) * _LANE)
            else:
                break

    w_resident = 2 * tk * tn * w_item                       # double-buffered W
    per_row = 2 * tk * x_item + 2 * tn * out_item + tn * 4  # 2x x, 2x out, f32 acc
    tm = (budget - w_resident) // max(per_row, 1)
    tm = max(_SUBLANE, min(int(tm), 1024))
    tm = (tm // _SUBLANE) * _SUBLANE
    tm = min(tm, _round_up(B, _SUBLANE))
    return tm, tn, tk


def quadratic_forward(x: jax.Array, w: jax.Array, *,
                      force_pallas: bool = False,
                      use_bf16_matmul: bool = False) -> jax.Array:
    """x: (B, input_dim); w: (output_dim, input_dim)  [PyTorch nn.Linear layout].

    Output dtype follows x.dtype (matches torch since weight dtype == x dtype).
    """
    B, K = x.shape
    N, Kw = w.shape
    assert Kw == K, f"weight input dim {Kw} != x input dim {K}"

    # Small-shape fallback: everything pads to one (8,128) tile and fixed
    # pallas_call + DMA setup overhead dominates -- fused XLA is strictly faster.
    if not force_pallas and (2 * B * K * N) < (1 << 20):
        return (jnp.square(x) @ w.T).astype(x.dtype)

    x_item = jnp.dtype(x.dtype).itemsize
    w_store_dtype = jnp.bfloat16 if use_bf16_matmul else w.dtype
    w_item = jnp.dtype(w_store_dtype).itemsize
    out_item = x_item

    budget, vmem_limit = _vmem_caps()
    tm, tn, tk = _choose_tiles(B, K, N, x_item, w_item, out_item, budget)

    # Pad K and N up to the chosen tile multiples (zero pads are exact: 0**2=0
    # contributes nothing to the contraction; extra N columns are sliced off).
    kp = _round_up(K, tk)
    npad = _round_up(N, tn)

    wt = w.T                                            # (K, N): one-time transpose
    if kp != K or npad != N:
        wt = jnp.pad(wt, ((0, kp - K), (0, npad - N)))
    wt = wt.astype(w_store_dtype)
    if kp != K:
        x = jnp.pad(x, ((0, 0), (0, kp - K)))

    grid = (pl.cdiv(B, tm), npad // tn, kp // tk)

    cost = pl.CostEstimate(
        flops=2 * B * K * N + B * K,
        bytes_accessed=x_item * B * kp + out_item * B * npad + w_item * kp * npad,
        transcendentals=0,
    )

    kernel = functools.partial(_quadratic_kernel, bf16_mxu=use_bf16_matmul)

    out = pl.pallas_call(
        kernel,
        out_shape=jax.ShapeDtypeStruct((B, npad), x.dtype),
        grid_spec=pltpu.PrefetchScalarGridSpec(
            num_scalar_prefetch=0,
            grid=grid,
            in_specs=[
                # x: tiled over (batch, K), pipelined/double-buffered.
                pl.BlockSpec((tm, tk), lambda i, j, k: (i, k)),
                # W^T: tiled over (K, N); if the N/K grid is (1,1) the block
                # index is constant -> fetched once, resident in VMEM.
                pl.BlockSpec((tk, tn), lambda i, j, k: (k, j)),
            ],
            out_specs=pl.BlockSpec((tm, tn), lambda i, j, k: (i, j)),
            scratch_shapes=[pltpu.VMEM((tm, tn), jnp.float32)],
        ),
        compiler_params=pltpu.CompilerParams(
            # batch / N tiles independent -> parallel (v7x megacore); K is the
            # reduction over the resident accumulator -> arbitrary, innermost.
            dimension_semantics=("parallel", "parallel", "arbitrary"),
            vmem_limit_bytes=int(vmem_limit),
        ),
        cost_estimate=cost,
    )(x, wt)

    if npad != N:
        out = out[:, :N]
    return out


if __name__ == "__main__":
    key = jax.random.PRNGKey(0)
    kx, kw = jax.random.split(key)

    batch = 8
    input_dim = 32
    output_dim = 16

    x = jax.random.normal(kx, (batch, input_dim), dtype=jnp.float32)
    # PyTorch nn.Linear layout: (output_dim, input_dim).
    w = jax.random.normal(kw, (output_dim, input_dim), dtype=jnp.float32) * (
        1.0 / jnp.sqrt(jnp.float32(input_dim))
    )

    # Exercise the Pallas kernel path explicitly (the auto path would take the
    # small-shape XLA fallback at these tiny sizes).
    out = quadratic_forward(x, w, force_pallas=True)
    out = jax.block_until_ready(out)

    ref = jnp.square(x) @ w.T
    assert out.shape == (batch, output_dim)
    assert jnp.allclose(out, ref, atol=1e-5, rtol=1e-5)

    # Also sanity-check the auto (fallback) path.
    out_auto = jax.block_until_ready(quadratic_forward(x, w))
    assert jnp.allclose(out_auto, ref, atol=1e-5, rtol=1e-5)

    print("KERNEL_OK")
</pallas_src>

<mosaic_0001>
module attributes {stable_mosaic.version = 11 : i64} {
  func.func @_quadratic_kernel(%arg0: i32, %arg1: i32, %arg2: i32, %arg3: memref<8x128xf32, #tpu.memory_space<vmem>>, %arg4: memref<128x128xf32, #tpu.memory_space<vmem>>, %arg5: memref<8x128xf32, #tpu.memory_space<vmem>>, %arg6: memref<8x128xf32, #tpu.memory_space<vmem>>) attributes {dimension_semantics = [#tpu.dimension_semantics<parallel>, #tpu.dimension_semantics<parallel>, #tpu.dimension_semantics<arbitrary>], iteration_bounds = array<i64: 1, 1, 1>, scalar_prefetch = 0 : i64, scratch_operands = 1 : i64, tpu.core_type = #tpu.core_type<tc>, window_params = [{transform_indices = @transform_0, window_bounds = array<i64: 8, 128>}, {transform_indices = @transform_1, window_bounds = array<i64: 128, 128>}, {transform_indices = @transform_2, window_bounds = array<i64: 8, 128>}]} {
    %c0_i32 = arith.constant 0 : i32
    %0 = arith.cmpi eq, %arg2, %c0_i32 : i32
    %1 = arith.extui %0 : i1 to i32
    %c0_i32_0 = arith.constant 0 : i32
    %2 = arith.cmpi ne, %1, %c0_i32_0 : i32
    scf.if %2 {
      %cst_10 = arith.constant 0.000000e+00 : f32
      %13 = vector.broadcast %cst_10 : f32 to vector<8x128xf32>
      %c0_11 = arith.constant 0 : index
      %c0_12 = arith.constant 0 : index
      %14 = vector.load %arg6[%c0_11, %c0_12] : memref<8x128xf32, #tpu.memory_space<vmem>>, vector<8x128xf32>
      tpu.vector_store %arg6[%c0_11, %c0_12], %13 {strides = array<i32>} : memref<8x128xf32, #tpu.memory_space<vmem>>, vector<8x128xf32>,
    } else {
    }
    %c0 = arith.constant 0 : index
    %c0_1 = arith.constant 0 : index
    %3 = vector.load %arg3[%c0, %c0_1] : memref<8x128xf32, #tpu.memory_space<vmem>>, vector<8x128xf32>
    %4 = arith.mulf %3, %3 : vector<8x128xf32>
    %c0_2 = arith.constant 0 : index
    %c0_3 = arith.constant 0 : index
    %5 = vector.load %arg6[%c0_2, %c0_3] : memref<8x128xf32, #tpu.memory_space<vmem>>, vector<8x128xf32>
    %c0_4 = arith.constant 0 : index
    %c0_5 = arith.constant 0 : index
    %6 = vector.load %arg4[%c0_4, %c0_5] : memref<128x128xf32, #tpu.memory_space<vmem>>, vector<128x128xf32>
    %cst = arith.constant dense<0.000000e+00> : vector<8x128xf32>
    %7 = tpu.matmul %4, %6, %cst {dimension_numbers = #tpu.dot_dimension_numbers<[1], [0], [0], [1], [0, 0, 1, 1], [], []>} : vector<8x128xf32>, vector<128x128xf32>, vector<8x128xf32> -> vector<8x128xf32>
    %8 = arith.addf %5, %7 : vector<8x128xf32>
    %c0_6 = arith.constant 0 : index
    %c0_7 = arith.constant 0 : index
    %9 = vector.load %arg6[%c0_6, %c0_7] : memref<8x128xf32, #tpu.memory_space<vmem>>, vector<8x128xf32>
    tpu.vector_store %arg6[%c0_6, %c0_7], %8 {strides = array<i32>} : memref<8x128xf32, #tpu.memory_space<vmem>>, vector<8x128xf32>,
    %c0_i32_8 = arith.constant 0 : i32
    %10 = arith.cmpi eq, %arg2, %c0_i32_8 : i32
    %11 = arith.extui %10 : i1 to i32
    %c0_i32_9 = arith.constant 0 : i32
    %12 = arith.cmpi ne, %11, %c0_i32_9 : i32
    scf.if %12 {
      %c0_10 = arith.constant 0 : index
      %c0_11 = arith.constant 0 : index
      %13 = vector.load %arg6[%c0_10, %c0_11] : memref<8x128xf32, #tpu.memory_space<vmem>>, vector<8x128xf32>
      %c0_12 = arith.constant 0 : index
      %c0_13 = arith.constant 0 : index
      %14 = vector.load %arg5[%c0_12, %c0_13] : memref<8x128xf32, #tpu.memory_space<vmem>>, vector<8x128xf32>
      tpu.vector_store %arg5[%c0_12, %c0_13], %13 {strides = array<i32>} : memref<8x128xf32, #tpu.memory_space<vmem>>, vector<8x128xf32>,
    } else {
    }
    return
  }
  func.func @transform_0(%arg0: i32, %arg1: i32, %arg2: i32) -> (i32, i32) {
    %c0_i32 = arith.constant 0 : i32
    return %arg0, %arg2 : i32, i32
  }
  func.func @transform_1(%arg0: i32, %arg1: i32, %arg2: i32) -> (i32, i32) {
    %c0_i32 = arith.constant 0 : i32
    return %arg2, %arg1 : i32, i32
  }
  func.func @transform_2(%arg0: i32, %arg1: i32, %arg2: i32) -> (i32, i32) {
    %c0_i32 = arith.constant 0 : i32
    return %arg0, %arg1 : i32, i32
  }
}

</mosaic_0001>

<bundles_post_ra>
// kernel: tpu_custom_call.1
= control target key start
LH: loop header
LB: loop body
LE: loop exit
PB: predicated region body
PF: predicated region fallthrough
CT: control target
= control target key end

     0   :  { %7 = vsyncpa [#allocation4], 0  ;;  %s311_s0 = inlined_call_operand.hbm [shape: f32[8,128], index: 0, kind: input, shape index: {}]   ;;  %s312_s1 = inlined_call_operand.hbm [shape: f32[128,128], index: 1, kind: input, shape index: {}]   ;;  %s313_s2 = inlined_call_operand.hbm [shape: f32[8,128], index: 2, kind: output, shape index: {}]  }
   0x1   :  { %8 = vsyncpa [#allocation7], 0 }
   0x2   :  { %9 = vsyncpa [#allocation5], 0  ;;  %s280_s9 = smov [#allocation3]   ;;  %s281_s11 = smov [#allocation6]  }
   0x3   :  { %s16_s10 = sshll.u32 %s280_s9, 4  ;;  %s25_s12 = sshll.u32 %s281_s11, 4  ;;  %s17_s10 = int_to_ptr.vmem [resolvable:$true] %s16_s10  ;;  %s26_s12 = int_to_ptr.vmem [resolvable:$true] %s25_s12 }
   0x4   :  { %s222_s13 = scalar_lea.vmem %s17_s10, 128  ;;  %p227_p1 = scmp.lt.s32.totalorder %s17_s10, %s17_s10 }
   0x5   :  { %p223_p0 = scmp.ne.s32.totalorder %s17_s10, %s222_s13  ;;  %p228_p2 = scmp.lt.s32.totalorder %s222_s13, %s222_s13 }
   0x7   :  { %p229_p3 = por %p228_p2, %p227_p1 }
   0x9   :  { %p230_p4 = pnand %p229_p3, %p223_p0 }
   0xb   :  { %233 = shalt.err (!%p230_p4)
}
   0xc   :  { %19 = dma.hbm_to_vmem [thread:$0]  %s311_s0, 128, %s17_s10, [#allocation4]  }
   0xd   :  { %s242_s16 = scalar_lea.vmem %s26_s12, 2048  ;;  %p247_p6 = scmp.lt.s32.totalorder %s26_s12, %s26_s12 }
   0xe   :  { %p243_p5 = scmp.ne.s32.totalorder %s26_s12, %s242_s16  ;;  %p248_p7 = scmp.lt.s32.totalorder %s242_s16, %s242_s16 }
  0x10   :  { %p249_p8 = por %p248_p7, %p247_p6 }
  0x12   :  { %p250_p9 = pnand %p249_p8, %p243_p5 }
  0x14   :  { %253 = shalt.err (!%p250_p9)
}
  0x15   :  { %s282_s17 = smov 128   ;;  %s283_s18 = smov 8  }
  0x16   :  { %31 = dma.hbm_to_vmem [thread:$0]  %s312_s1, 2048, %s26_s12, [#allocation7], %s282_s17, %s282_s17, %s283_s18  }
  0x17   :  { %274 = dma.done.wait [#allocation4], 128  }
  0x18   :  { %275 = vsyncadd [#allocation4], 4294967168 }
  0x19   :  { %276 = dma.done.wait [#allocation7], 2048  }
  0x1a   :  { %277 = vsyncadd [#allocation7], 4294965248  ;;  %v284_v0 = vmov 0.0   ;;  %vm285_vm0 = vmmov 0   ;;  %v61_v1 = vld [vmem:[#allocation6 + $0x78] sm:$0xff]  ;;  %v60_v2 = vld [vmem:[#allocation6 + $0x70] sm:$0xff] }
  0x1b   :  { %172 = vmatprep.subr.mxu0 %v284_v0  ;;  %204 = vmatprep.mubr.msk.f32.mxu0 %vm285_vm0, %v284_v0  ;;  %v59_v3 = vld [vmem:[#allocation6 + $0x68] sm:$0xff]  ;;  %v58_v4 = vld [vmem:[#allocation6 + $0x60] sm:$0xff]  ;;  %v57_v5 = vld [vmem:[#allocation6 + $0x58] sm:$0xff]  ;;  %s286_s0 = smov [#allocation8]  }
  0x1c   :  { %173 = vmatpush3.msra.mxu0 %v61_v1  ;;  %v56_v6 = vld [vmem:[#allocation6 + $0x50] sm:$0xff]  ;;  %v55_v7 = vld [vmem:[#allocation6 + $0x48] sm:$0xff]  ;;  %v54_v8 = vld [vmem:[#allocation6 + $0x40] sm:$0xff]  ;;  %s145_s1 = sshll.u32 %s286_s0, 4  ;;  %s146_s1 = int_to_ptr.vmem [resolvable:$true] %s145_s1 }
  0x1d   :  { %174 = vmatprep.subr.mxu0 %v284_v0  ;;  %v53_v9 = vld [vmem:[#allocation6 + $0x38] sm:$0xff]  ;;  %v52_v10 = vld [vmem:[#allocation6 + $0x30] sm:$0xff]  ;;  %v51_v11 = vld [vmem:[#allocation6 + $0x28] sm:$0xff]  ;;  %s254_s21 = scalar_lea.vmem %s146_s1, 128  ;;  %p259_p11 = scmp.lt.s32.totalorder %s146_s1, %s146_s1 }
  0x1e   :  { %175 = vmatpush3.msra.mxu0 %v60_v2  ;;  %v50_v12 = vld [vmem:[#allocation6 + $0x20] sm:$0xff]  ;;  %v49_v13 = vld [vmem:[#allocation6 + $0x18] sm:$0xff]  ;;  %v48_v14 = vld [vmem:[#allocation6 + $0x10] sm:$0xff]  ;;  %p255_p10 = scmp.ne.s32.totalorder %s146_s1, %s254_s21  ;;  %p260_p12 = scmp.lt.s32.totalorder %s254_s21, %s254_s21 }
  0x1f   :  { %176 = vmatprep.subr.mxu0 %v284_v0  ;;  %v43_v15 = vld [vmem:[#allocation3] sm:$0xff]  ;;  %v47_v16 = vld [vmem:[#allocation6 + $0x8] sm:$0xff]  ;;  %v46_v17 = vld [vmem:[#allocation6] sm:$0xff] }
  0x20   :  { %177 = vmatpush3.msra.mxu0 %v59_v3  ;;  %v44_v18 = vmul.f32 %v43_v15, %v43_v15  ;;  %p261_p13 = por %p260_p12, %p259_p11 }
  0x21   :  { %178 = vmatprep.subr.mxu0 %v284_v0 }
  0x22   :  { %179 = vmatpush3.msra.mxu0 %v58_v4  ;;  %p262_p0 = pnand %p261_p13, %p255_p10 }
  0x23   :  { %180 = vmatprep.subr.mxu0 %v284_v0 }
  0x24   :  { %181 = vmatpush3.msra.mxu0 %v57_v5 }
  0x25   :  { %182 = vmatprep.subr.mxu0 %v284_v0 }
  0x26   :  { %183 = vmatpush3.msra.mxu0 %v56_v6 }
  0x27   :  { %184 = vmatprep.subr.mxu0 %v284_v0 }
  0x28   :  { %185 = vmatpush3.msra.mxu0 %v55_v7 }
  0x29   :  { %186 = vmatprep.subr.mxu0 %v284_v0 }
  0x2a   :  { %187 = vmatpush3.msra.mxu0 %v54_v8 }
  0x2b   :  { %188 = vmatprep.subr.mxu0 %v284_v0 }
  0x2c   :  { %189 = vmatpush3.msra.mxu0 %v53_v9 }
  0x2d   :  { %190 = vmatprep.subr.mxu0 %v284_v0 }
  0x2e   :  { %191 = vmatpush3.msra.mxu0 %v52_v10 }
  0x2f   :  { %192 = vmatprep.subr.mxu0 %v284_v0 }
  0x30   :  { %193 = vmatpush3.msra.mxu0 %v51_v11 }
  0x31   :  { %194 = vmatprep.subr.mxu0 %v284_v0 }
  0x32   :  { %195 = vmatpush3.msra.mxu0 %v50_v12 }
  0x33   :  { %196 = vmatprep.subr.mxu0 %v284_v0 }
  0x34   :  { %197 = vmatpush3.msra.mxu0 %v49_v13 }
  0x35   :  { %198 = vmatprep.subr.mxu0 %v284_v0 }
  0x36   :  { %199 = vmatpush3.msra.mxu0 %v48_v14 }
  0x37   :  { %200 = vmatprep.subr.mxu0 %v284_v0 }
  0x38   :  { %201 = vmatpush3.msra.mxu0 %v47_v16 }
  0x39   :  { %202 = vmatprep.subr.mxu0 %v284_v0 }
  0x3a   :  { %203 = vmatpush3.msra.mxu0 %v46_v17 }
  0x3b   :  { %205 = vmatmul.mubr.f32.vlgmr.msra.gmra.mxu0 %v44_v18 }
  0xfb   :  { %v128_v19 = vpop.f32.mrf.mxu0 }
  0xfc   :  { %138 = vst [vmem:[#allocation8] sm:$0xff] %v128_v19 }
  0xfd   :  { %v206_v20 = vpop.f32.mrf.mxu0 }
  0xfe   :  { %265 = shalt.err (!%p262_p0)
}
  0xff   :  { %148 = dma.vmem_to_hbm [thread:$0]  %s146_s1, 128, %s313_s2, [#allocation5]  }
 0x100   :  { %278 = dma.done.wait [#allocation5], 128  }
 0x101   :  { %279 = vsyncadd [#allocation5], 4294967168 }
 0x102   :  { %152 = vsyncpa [#allocation4], 1 }
 0x103   :  { %153 = vsyncpa [#allocation7], 1 }
 0x104   :  { %154 = vsyncpa [#allocation5], 1 }

</bundles_post_ra>
